<compile_context>
chip_gen: v6e
topology: v6e:2x2x1
jax: 0.10.0
libtpu: 0.0.40
codegen_flags: <defaults>
</compile_context>

<pallas_src>
import jax
import jax.numpy as jnp
from jax.experimental import pallas as pl
from jax.experimental.pallas import tpu as pltpu


TILE_N_MAX = 4096  # max lane tile along the batch; multiple of 128


def _round_up(x, m):
    return (x + m - 1) // m * m


def _mlp_kernel(x_ref, w1_ref, b1_ref, w2_ref, b2_ref, w3_ref, b3_ref, o_ref):
    # x:  (D_in, TN)    f32  (batch on lanes)
    # w1: (D_h1, D_in)  f32   b1: (D_h1, 1)  f32
    # w2: (D_h2, D_h1)  f32   b2: (D_h2, 1)  f32
    # w3: (D_out, D_h2) f32   b3: (D_out, 1) f32
    # o:  (TN, D_out)   f32
    x = x_ref[...]
    h1 = jnp.dot(w1_ref[...], x, preferred_element_type=jnp.float32)
    h1 = jnp.maximum(h1 + b1_ref[...], 0.0)                        # (D_h1, TN), f32
    h2 = jnp.dot(w2_ref[...], h1, preferred_element_type=jnp.float32)
    h2 = jnp.maximum(h2 + b2_ref[...], 0.0)                        # (D_h2, TN), f32
    h3 = jnp.dot(w3_ref[...], h2, preferred_element_type=jnp.float32) + b3_ref[...]
    # Emit (N, D_out) directly: XLU transpose of the tiny (D_out, TN) result; the
    # narrow 8-lane store is cheap slack in this memory-bound kernel.
    o_ref[...] = h3.T


@jax.jit
def mlp_forward(x_t, w1, b1, w2, b2, w3, b3):
    """x_t: (D_in, N) — the raw `input` of the PyTorch module (it transposes internally).
    Weights are in PyTorch (out_features, in_features) layout; biases are (out_features,).
    Returns (N, D_out) float32, matching network.forward."""
    x = jnp.asarray(x_t, jnp.float32)                  # (D_in, N); stays f32, no pad
    D_in, N = x.shape
    D_h1, D_h2, D_out = w1.shape[0], w2.shape[0], w3.shape[0]

    w1c, w2c, w3c = (w.astype(jnp.float32) for w in (w1, w2, w3))
    b1c = b1.astype(jnp.float32).reshape(D_h1, 1)
    b2c = b2.astype(jnp.float32).reshape(D_h2, 1)
    b3c = b3.astype(jnp.float32).reshape(D_out, 1)

    # Lane tile over N: big (amortize per-step overhead), 128-aligned, and chosen so a
    # large batch yields >= 2 parallel grid steps (v7x dual TensorCore).  The edge /
    # oversized block is a masked partial block — no wrapper pad, no output slice.
    tile_n = min(TILE_N_MAX, _round_up(pl.cdiv(N, 2), 128))
    grid = (pl.cdiv(N, tile_n),)

    cost = pl.CostEstimate(
        flops=2 * N * (D_in * D_h1 + D_h1 * D_h2 + D_h2 * D_out),
        transcendentals=0,
        bytes_accessed=4 * (N * (D_in + D_out)
                            + D_h1 * D_in + D_h2 * D_h1 + D_out * D_h2
                            + D_h1 + D_h2 + D_out),
    )

    return pl.pallas_call(
        _mlp_kernel,
        out_shape=jax.ShapeDtypeStruct((N, D_out), jnp.float32),
        grid=grid,
        in_specs=[
            pl.BlockSpec((D_in, tile_n), lambda i: (0, i)),   # x tiled along N (lanes)
            pl.BlockSpec((D_h1, D_in), lambda i: (0, 0)),     # weights/biases resident
            pl.BlockSpec((D_h1, 1), lambda i: (0, 0)),
            pl.BlockSpec((D_h2, D_h1), lambda i: (0, 0)),
            pl.BlockSpec((D_h2, 1), lambda i: (0, 0)),
            pl.BlockSpec((D_out, D_h2), lambda i: (0, 0)),
            pl.BlockSpec((D_out, 1), lambda i: (0, 0)),
        ],
        out_specs=pl.BlockSpec((tile_n, D_out), lambda i: (i, 0)),  # (N, D_out) directly
        compiler_params=pltpu.CompilerParams(
            dimension_semantics=("parallel",),      # shard N-tiles across TensorCores
            vmem_limit_bytes=32 * 1024 * 1024,      # usage ~2.5 MB @ tile 4096; safe on v5e/v7x
        ),
        cost_estimate=cost,
    )(x, w1c, b1c, w2c, b2c, w3c, b3c)


def init_linear(key, fan_in, fan_out):
    """Deterministic init matching nn.Linear's U(-1/sqrt(fan_in), 1/sqrt(fan_in))."""
    kw, kb = jax.random.split(key)
    bound = 1.0 / jnp.sqrt(jnp.asarray(fan_in, jnp.float32))
    w = jax.random.uniform(kw, (fan_out, fan_in), jnp.float32, -bound, bound)
    b = jax.random.uniform(kb, (fan_out,), jnp.float32, -bound, bound)
    return w, b


if __name__ == "__main__":
    # Shapes consistent with the MLP: D_in=16, D_h1=32, D_h2=32, D_out=8.
    D_in, D_h1, D_h2, D_out = 16, 32, 32, 8

    key = jax.random.PRNGKey(0)
    k_x, k1, k2, k3, k_big = jax.random.split(key, 5)

    w1, b1 = init_linear(k1, D_in, D_h1)
    w2, b2 = init_linear(k2, D_h1, D_h2)
    w3, b3 = init_linear(k3, D_h2, D_out)

    def ref_fwd(x_t):  # pure-JAX f32 reference of the PyTorch forward
        h = jnp.maximum(x_t.T @ w1.T + b1, 0.0)
        h = jnp.maximum(h @ w2.T + b2, 0.0)
        return h @ w3.T + b3

    # Small batch: input is (D_in, N); the module transposes internally (S.t()).
    N = 8
    x = jax.random.normal(k_x, (D_in, N), dtype=jnp.float32)
    out = jax.block_until_ready(mlp_forward(x, w1, b1, w2, b2, w3, b3))
    assert out.shape == (N, D_out)
    assert jnp.allclose(out, ref_fwd(x), atol=2e-2, rtol=2e-2)

    # Larger batch: exercises >=2 parallel grid steps and the masked partial edge tile.
    N_big = 640  # tile_n = 384 -> 2 grid steps, second block partially masked
    x_big = jax.random.normal(k_big, (D_in, N_big), dtype=jnp.float32)
    out_big = jax.block_until_ready(mlp_forward(x_big, w1, b1, w2, b2, w3, b3))
    assert out_big.shape == (N_big, D_out)
    assert jnp.allclose(out_big, ref_fwd(x_big), atol=2e-2, rtol=2e-2)

    print("KERNEL_OK")
</pallas_src>

<mosaic_0001>
module attributes {stable_mosaic.version = 11 : i64} {
  func.func @_mlp_kernel(%arg0: i32, %arg1: memref<16x128xf32, #tpu.memory_space<vmem>>, %arg2: memref<32x16xf32, #tpu.memory_space<vmem>>, %arg3: memref<32x1xf32, #tpu.memory_space<vmem>>, %arg4: memref<32x32xf32, #tpu.memory_space<vmem>>, %arg5: memref<32x1xf32, #tpu.memory_space<vmem>>, %arg6: memref<8x32xf32, #tpu.memory_space<vmem>>, %arg7: memref<8x1xf32, #tpu.memory_space<vmem>>, %arg8: memref<128x8xf32, #tpu.memory_space<vmem>>) attributes {dimension_semantics = [#tpu.dimension_semantics<parallel>], iteration_bounds = array<i64: 1>, scalar_prefetch = 0 : i64, scratch_operands = 0 : i64, tpu.core_type = #tpu.core_type<tc>, window_params = [{transform_indices = @transform_0, window_bounds = array<i64: 16, 128>}, {pipeline_mode = #tpu.pipeline_mode<synchronous>, transform_indices = @transform_1, window_bounds = array<i64: 32, 16>}, {pipeline_mode = #tpu.pipeline_mode<synchronous>, transform_indices = @transform_2, window_bounds = array<i64: 32, 1>}, {pipeline_mode = #tpu.pipeline_mode<synchronous>, transform_indices = @transform_3, window_bounds = array<i64: 32, 32>}, {pipeline_mode = #tpu.pipeline_mode<synchronous>, transform_indices = @transform_4, window_bounds = array<i64: 32, 1>}, {pipeline_mode = #tpu.pipeline_mode<synchronous>, transform_indices = @transform_5, window_bounds = array<i64: 8, 32>}, {pipeline_mode = #tpu.pipeline_mode<synchronous>, transform_indices = @transform_6, window_bounds = array<i64: 8, 1>}, {transform_indices = @transform_7, window_bounds = array<i64: 128, 8>}]} {
    %c0 = arith.constant 0 : index
    %c0_0 = arith.constant 0 : index
    %0 = vector.load %arg1[%c0, %c0_0] : memref<16x128xf32, #tpu.memory_space<vmem>>, vector<16x128xf32>
    %c0_1 = arith.constant 0 : index
    %c0_2 = arith.constant 0 : index
    %1 = vector.load %arg2[%c0_1, %c0_2] : memref<32x16xf32, #tpu.memory_space<vmem>>, vector<32x16xf32>
    %cst = arith.constant dense<0.000000e+00> : vector<32x128xf32>
    %2 = tpu.matmul %1, %0, %cst {dimension_numbers = #tpu.dot_dimension_numbers<[1], [0], [0], [1], [0, 0, 1, 1], [], []>} : vector<32x16xf32>, vector<16x128xf32>, vector<32x128xf32> -> vector<32x128xf32>
    %c0_3 = arith.constant 0 : index
    %c0_4 = arith.constant 0 : index
    %3 = vector.load %arg3[%c0_3, %c0_4] : memref<32x1xf32, #tpu.memory_space<vmem>>, vector<32x1xf32>
    %4 = vector.broadcast %3 : vector<32x1xf32> to vector<32x128xf32>
    %5 = arith.addf %2, %4 : vector<32x128xf32>
    %cst_5 = arith.constant 0.000000e+00 : f32
    %6 = vector.broadcast %cst_5 : f32 to vector<32x128xf32>
    %7 = arith.maximumf %5, %6 : vector<32x128xf32>
    %c0_6 = arith.constant 0 : index
    %c0_7 = arith.constant 0 : index
    %8 = vector.load %arg4[%c0_6, %c0_7] : memref<32x32xf32, #tpu.memory_space<vmem>>, vector<32x32xf32>
    %cst_8 = arith.constant dense<0.000000e+00> : vector<32x128xf32>
    %9 = tpu.matmul %8, %7, %cst_8 {dimension_numbers = #tpu.dot_dimension_numbers<[1], [0], [0], [1], [0, 0, 1, 1], [], []>} : vector<32x32xf32>, vector<32x128xf32>, vector<32x128xf32> -> vector<32x128xf32>
    %c0_9 = arith.constant 0 : index
    %c0_10 = arith.constant 0 : index
    %10 = vector.load %arg5[%c0_9, %c0_10] : memref<32x1xf32, #tpu.memory_space<vmem>>, vector<32x1xf32>
    %11 = vector.broadcast %10 : vector<32x1xf32> to vector<32x128xf32>
    %12 = arith.addf %9, %11 : vector<32x128xf32>
    %cst_11 = arith.constant 0.000000e+00 : f32
    %13 = vector.broadcast %cst_11 : f32 to vector<32x128xf32>
    %14 = arith.maximumf %12, %13 : vector<32x128xf32>
    %c0_12 = arith.constant 0 : index
    %c0_13 = arith.constant 0 : index
    %15 = vector.load %arg6[%c0_12, %c0_13] : memref<8x32xf32, #tpu.memory_space<vmem>>, vector<8x32xf32>
    %cst_14 = arith.constant dense<0.000000e+00> : vector<8x128xf32>
    %16 = tpu.matmul %15, %14, %cst_14 {dimension_numbers = #tpu.dot_dimension_numbers<[1], [0], [0], [1], [0, 0, 1, 1], [], []>} : vector<8x32xf32>, vector<32x128xf32>, vector<8x128xf32> -> vector<8x128xf32>
    %c0_15 = arith.constant 0 : index
    %c0_16 = arith.constant 0 : index
    %17 = vector.load %arg7[%c0_15, %c0_16] : memref<8x1xf32, #tpu.memory_space<vmem>>, vector<8x1xf32>
    %18 = vector.broadcast %17 : vector<8x1xf32> to vector<8x128xf32>
    %19 = arith.addf %16, %18 : vector<8x128xf32>
    %20 = tpu.transpose %19, [1, 0] : vector<8x128xf32> -> vector<128x8xf32>
    %c0_17 = arith.constant 0 : index
    %c0_18 = arith.constant 0 : index
    %21 = vector.load %arg8[%c0_17, %c0_18] : memref<128x8xf32, #tpu.memory_space<vmem>>, vector<128x8xf32>
    tpu.vector_store %arg8[%c0_17, %c0_18], %20 {strides = array<i32>} : memref<128x8xf32, #tpu.memory_space<vmem>>, vector<128x8xf32>,
    return
  }
  func.func @transform_0(%arg0: i32) -> (i32, i32) {
    %c0_i32 = arith.constant 0 : i32
    %c0_i32_0 = arith.constant 0 : i32
    return %c0_i32, %arg0 : i32, i32
  }
  func.func @transform_1(%arg0: i32) -> (i32, i32) {
    %c0_i32 = arith.constant 0 : i32
    %c0_i32_0 = arith.constant 0 : i32
    %c0_i32_1 = arith.constant 0 : i32
    return %c0_i32, %c0_i32_0 : i32, i32
  }
  func.func @transform_2(%arg0: i32) -> (i32, i32) {
    %c0_i32 = arith.constant 0 : i32
    %c0_i32_0 = arith.constant 0 : i32
    %c0_i32_1 = arith.constant 0 : i32
    return %c0_i32, %c0_i32_0 : i32, i32
  }
  func.func @transform_3(%arg0: i32) -> (i32, i32) {
    %c0_i32 = arith.constant 0 : i32
    %c0_i32_0 = arith.constant 0 : i32
    %c0_i32_1 = arith.constant 0 : i32
    return %c0_i32, %c0_i32_0 : i32, i32
  }
  func.func @transform_4(%arg0: i32) -> (i32, i32) {
    %c0_i32 = arith.constant 0 : i32
    %c0_i32_0 = arith.constant 0 : i32
    %c0_i32_1 = arith.constant 0 : i32
    return %c0_i32, %c0_i32_0 : i32, i32
  }
  func.func @transform_5(%arg0: i32) -> (i32, i32) {
    %c0_i32 = arith.constant 0 : i32
    %c0_i32_0 = arith.constant 0 : i32
    %c0_i32_1 = arith.constant 0 : i32
    return %c0_i32, %c0_i32_0 : i32, i32
  }
  func.func @transform_6(%arg0: i32) -> (i32, i32) {
    %c0_i32 = arith.constant 0 : i32
    %c0_i32_0 = arith.constant 0 : i32
    %c0_i32_1 = arith.constant 0 : i32
    return %c0_i32, %c0_i32_0 : i32, i32
  }
  func.func @transform_7(%arg0: i32) -> (i32, i32) {
    %c0_i32 = arith.constant 0 : i32
    %c0_i32_0 = arith.constant 0 : i32
    return %arg0, %c0_i32 : i32, i32
  }
}

</mosaic_0001>

<bundles_post_ra>
// kernel: mlp_forward.1
= control target key start
LH: loop header
LB: loop body
LE: loop exit
PB: predicated region body
PF: predicated region fallthrough
CT: control target
= control target key end

     0   :  { %12 = vsyncpa [#allocation3], 0  ;;  %vm57_vm0 = vcmask 130048   ;;  %v527_v3 = vmov 0   ;;  %vm187_vm1 = vcmask 261120   ;;  %v528_v36 = vmov 0.0   ;;  %s661_s0 = inlined_call_operand.vmem [shape: f32[16,8], index: 0, kind: input, shape index: {}]   ;;  %s662_s1 = inlined_call_operand.vmem [shape: f32[32,16], index: 1, kind: input, shape index: {}]   ;;  %s663_s2 = inlined_call_operand.vmem [shape: f32[32,1], index: 2, kind: input, shape index: {}]   ;;  %s664_s3 = inlined_call_operand.vmem [shape: f32[32,32], index: 3, kind: input, shape index: {}]   ;;  %s665_s4 = inlined_call_operand.vmem [shape: f32[32,1], index: 4, kind: input, shape index: {}]   ;;  %s666_s5 = inlined_call_operand.vmem [shape: f32[8,32], index: 5, kind: input, shape index: {}]   ;;  %s667_s6 = inlined_call_operand.vmem [shape: f32[8,1], index: 6, kind: input, shape index: {}]   ;;  %s668_s7 = inlined_call_operand.hbm [shape: f32[8,8], index: 7, kind: output, shape index: {}]  }
   0x1   :  { %v28_v0 = vld [vmem:[%s661_s0 + $0x8] sm:$0xff]  ;;  %v27_v1 = vld [vmem:[%s661_s0] sm:$0xff]  ;;  %503 = vset.pattern.permute.xlu0 %v527_v3  ;;  %v36_v5 = vld [vmem:[%s663_s2 + $0x18] sm:$0xff]  ;;  %504 = vset.pattern.permute.xlu1 %v527_v3  ;;  %vm529_vm2 = vmmov 0   ;;  %vm401_vm3 = vcmask 64512  }
   0x2   :  { %462 = vmatprep.subr.mxu0 %v28_v0  ;;  %v29_v2 = vld [vmem:[%s662_s1] sm:$0xff]  ;;  %v30_v4 = vld [vmem:[%s662_s1 + $0x8] sm:$0xff]  ;;  %v31_v6 = vld [vmem:[%s662_s1 + $0x10] sm:$0xff]  ;;  %54 = vperm.xlu0 %503, %v36_v5  }
   0x3   :  { %463 = vmatpush3.msra.mxu0 %v28_v0  ;;  %466 = vmatprep.mubr.msk.f32.mxu0 %vm57_vm0, %v29_v2  ;;  %v34_v7 = vld [vmem:[%s663_s2 + $0x8] sm:$0xff]  ;;  %v35_v8 = vld [vmem:[%s663_s2 + $0x10] sm:$0xff]  ;;  %v32_v9 = vld [vmem:[%s662_s1 + $0x18] sm:$0xff] }
   0x4   :  { %464 = vmatprep.subr.mxu0 %v27_v1  ;;  %44 = vperm.xlu1 %504, %v34_v7   ;;  %v33_v10 = vld [vmem:[%s663_s2] sm:$0xff]  ;;  %v166_v11 = vld [vmem:[%s665_s4 + $0x18] sm:$0xff]  ;;  %v165_v12 = vld [vmem:[%s665_s4 + $0x10] sm:$0xff] }
   0x5   :  { %465 = vmatpush3.msra.mxu0 %v27_v1  ;;  %v164_v13 = vld [vmem:[%s665_s4 + $0x8] sm:$0xff]  ;;  %v163_v14 = vld [vmem:[%s665_s4] sm:$0xff]  ;;  %v161_v34 = vld [vmem:[%s664_s3 + $0x10] sm:$0xff] }
   0x6   :  { %467 = vmatmul.mubr.msk.f32.vlgmr.msra.gmra.mxu0 %vm57_vm0, %v30_v4  ;;  %49 = vperm.xlu0 %503, %v35_v8   ;;  %v290_v15 = vld [vmem:[%s667_s6] sm:$0xff]  ;;  %v160_v33 = vld [vmem:[%s664_s3 + $0x8] sm:$0xff]  ;;  %v162_v35 = vld [vmem:[%s664_s3 + $0x18] sm:$0xff] }
   0x7   :  { %469 = vmatprep.mubr.msk.f32.mxu0 %vm57_vm0, %v31_v6  ;;  %v159_v16 = vld [vmem:[%s664_s3] sm:$0xff]  ;;  %486 = vmatprep.subr.mxu0 %v528_v36 }
   0x8   :  { %39 = vperm.xlu1 %504, %v33_v10   ;;  %480 = vmatprep.mubr.msk.f32.mxu1 %vm187_vm1, %v159_v16  ;;  %v289_v53 = vld [vmem:[%s666_s5] sm:$0xff] }
   0xa   :  { %470 = vmatmul.mubr.msk.f32.gmra.mxu0 %vm57_vm0, %v32_v9  ;;  %184 = vperm.xlu0 %503, %v166_v11  }
   0xb   :  { %494 = vmatprep.mubr.msk.f32.mxu0 %vm529_vm2, %v528_v36 }
   0xc   :  { %179 = vperm.xlu1 %504, %v165_v12  }
   0xe   :  { %174 = vperm.xlu0 %503, %v164_v13  }
  0x10   :  { %169 = vperm.xlu1 %504, %v163_v14  }
  0x12   :  { %293 = vperm.xlu0 %503, %v290_v15  }
  0x7d   :  { %v55_v17 = vpop.permute.xlu0 %54 }
  0x7f   :  { %v45_v19 = vpop.permute.xlu1 %44 }
  0x81   :  { %v50_v23 = vpop.permute.xlu0 %49 }
  0x83   :  { %v40_v28 = vpop.permute.xlu1 %39 }
  0x85   :  { %v185_v37 = vpop.permute.xlu0 %184 }
  0x87   :  { %v180_v39 = vpop.permute.xlu1 %179 }
  0x89   :  { %v175_v43 = vpop.permute.xlu0 %174 }
  0x8b   :  { %v170_v48 = vpop.permute.xlu1 %169 }
  0x8d   :  { %v294_v54 = vpop.permute.xlu0 %293 }
  0xc6   :  { %v468_v18 = vpop.f32.mrf.mxu0 }
  0xc7   :  { %v142_v25 = vadd.f32 %v468_v18, %v45_v19 }
  0xc8   :  { %v136_v20 = vpop.f32.mrf.mxu0 }
  0xc9   :  { %v137_v29 = vadd.f32 %v136_v20, %v40_v28  ;;  %v156_v31 = vmax.f32 %v142_v25, 0.0 }
  0xca   :  { %v471_v21 = vpop.f32.mrf.mxu0 }
  0xcb   :  { %v152_v22 = vadd.f32 %v471_v21, %v55_v17  ;;  %v155_v32 = vmax.f32 %v137_v29, 0.0 }
  0xcc   :  { %v146_v24 = vpop.f32.mrf.mxu0 }
  0xcd   :  { %v158_v26 = vmax.f32 %v152_v22, 0.0  ;;  %v147_v27 = vadd.f32 %v146_v24, %v50_v23 }
  0xcf   :  { %v157_v30 = vmax.f32 %v147_v27, 0.0  ;;  %472 = vmatprep.subr.mxu1 %v158_v26 }
  0xd0   :  { %473 = vmatpush3.msra.mxu1 %v158_v26 }
  0xd1   :  { %474 = vmatprep.subr.mxu1 %v157_v30 }
  0xd2   :  { %475 = vmatpush3.msra.mxu1 %v157_v30 }
  0xd3   :  { %476 = vmatprep.subr.mxu1 %v156_v31 }
  0xd4   :  { %477 = vmatpush3.msra.mxu1 %v156_v31 }
  0xd5   :  { %478 = vmatprep.subr.mxu1 %v155_v32 }
  0xd6   :  { %479 = vmatpush3.msra.mxu1 %v155_v32 }
  0xd7   :  { %481 = vmatmul.mubr.msk.f32.vlgmr.msra.gmra.mxu1 %vm187_vm1, %v160_v33 }
  0xd8   :  { %483 = vmatprep.mubr.msk.f32.mxu1 %vm187_vm1, %v161_v34 }
  0xdb   :  { %484 = vmatmul.mubr.msk.f32.gmra.mxu1 %vm187_vm1, %v162_v35 }
 0x197   :  { %v482_v38 = vpop.f32.mrf.mxu1 }
 0x198   :  { %v272_v45 = vadd.f32 %v482_v38, %v175_v43 }
 0x199   :  { %v266_v40 = vpop.f32.mrf.mxu1 }
 0x19a   :  { %v267_v49 = vadd.f32 %v266_v40, %v170_v48  ;;  %v286_v51 = vmax.f32 %v272_v45, 0.0 }
 0x19b   :  { %v485_v41 = vpop.f32.mrf.mxu1 }
 0x19c   :  { %v282_v42 = vadd.f32 %v485_v41, %v185_v37  ;;  %v285_v52 = vmax.f32 %v267_v49, 0.0 }
 0x19d   :  { %v276_v44 = vpop.f32.mrf.mxu1 }
 0x19e   :  { %v288_v46 = vmax.f32 %v282_v42, 0.0  ;;  %v277_v47 = vadd.f32 %v276_v44, %v180_v39 }
 0x1a0   :  { %v287_v50 = vmax.f32 %v277_v47, 0.0  ;;  %487 = vmatpush3.msra.mxu0 %v288_v46 }
 0x1a1   :  { %488 = vmatprep.subr.mxu0 %v528_v36 }
 0x1a2   :  { %489 = vmatpush3.msra.mxu0 %v287_v50 }
 0x1a3   :  { %490 = vmatprep.subr.mxu0 %v528_v36 }
 0x1a4   :  { %491 = vmatpush3.msra.mxu0 %v286_v51 }
 0x1a5   :  { %492 = vmatprep.subr.mxu0 %v528_v36 }
 0x1a6   :  { %493 = vmatpush3.msra.mxu0 %v285_v52 }
 0x1a7   :  { %495 = vmatmul.mubr.msk.f32.vlgmr.msra.gmra.mxu0 %vm187_vm1, %v289_v53 }
 0x267   :  { %v365_v55 = vpop.f32.mrf.mxu0 }
 0x268   :  { %v366_v56 = vadd.f32 %v365_v55, %v294_v54 }
 0x269   :  { %v496_v57 = vpop.f32.mrf.mxu0 }
 0x26a   :  { %369 = vxpose.xlu1.b32.start.end [1/1] (short) %v366_v56, 128 }
 0x2e6   :  { %v385_v58 = vpop.trf.xlu1 }
 0x2e7   :  { %402 = vst.msk [vmem:[#allocation2] sm:$0xff] %vm401_vm3, %v385_v58 }
 0x2ea   :  { %v386_v59 = vpop.trf.xlu1 }
 0x2eb   :  { %403 = vst.msk [vmem:[#allocation2 + $0x8] sm:$0xff] %vm401_vm3, %v386_v59 }
 0x2ee   :  { %v387_v60 = vpop.trf.xlu1 }
 0x2ef   :  { %404 = vst.msk [vmem:[#allocation2 + $0x10] sm:$0xff] %vm401_vm3, %v387_v60 }
 0x2f2   :  { %v388_v61 = vpop.trf.xlu1 }
 0x2f3   :  { %405 = vst.msk [vmem:[#allocation2 + $0x18] sm:$0xff] %vm401_vm3, %v388_v61 }
 0x2f6   :  { %v389_v62 = vpop.trf.xlu1 }
 0x2f7   :  { %406 = vst.msk [vmem:[#allocation2 + $0x20] sm:$0xff] %vm401_vm3, %v389_v62 }
 0x2fa   :  { %v390_v63 = vpop.trf.xlu1 }
 0x2fb   :  { %407 = vst.msk [vmem:[#allocation2 + $0x28] sm:$0xff] %vm401_vm3, %v390_v63 }
 0x2fe   :  { %v391_v0 = vpop.trf.xlu1 }
 0x2ff   :  { %408 = vst.msk [vmem:[#allocation2 + $0x30] sm:$0xff] %vm401_vm3, %v391_v0 }
 0x302   :  { %v392_v1 = vpop.trf.xlu1 }
 0x303   :  { %409 = vst.msk [vmem:[#allocation2 + $0x38] sm:$0xff] %vm401_vm3, %v392_v1 }
 0x306   :  { %v393_v2 = vpop.trf.xlu1 }
 0x307   :  { %410 = vst.msk [vmem:[#allocation2 + $0x40] sm:$0xff] %vm401_vm3, %v393_v2 }
 0x30a   :  { %v394_v3 = vpop.trf.xlu1 }
 0x30b   :  { %411 = vst.msk [vmem:[#allocation2 + $0x48] sm:$0xff] %vm401_vm3, %v394_v3 }
 0x30e   :  { %v395_v4 = vpop.trf.xlu1 }
 0x30f   :  { %412 = vst.msk [vmem:[#allocation2 + $0x50] sm:$0xff] %vm401_vm3, %v395_v4 }
 0x312   :  { %v396_v5 = vpop.trf.xlu1 }
 0x313   :  { %413 = vst.msk [vmem:[#allocation2 + $0x58] sm:$0xff] %vm401_vm3, %v396_v5 }
 0x316   :  { %v397_v6 = vpop.trf.xlu1 }
 0x317   :  { %414 = vst.msk [vmem:[#allocation2 + $0x60] sm:$0xff] %vm401_vm3, %v397_v6 }
 0x31a   :  { %v398_v7 = vpop.trf.xlu1 }
 0x31b   :  { %415 = vst.msk [vmem:[#allocation2 + $0x68] sm:$0xff] %vm401_vm3, %v398_v7 }
 0x31e   :  { %v399_v8 = vpop.trf.xlu1 }
 0x31f   :  { %416 = vst.msk [vmem:[#allocation2 + $0x70] sm:$0xff] %vm401_vm3, %v399_v8 }
 0x322   :  { %v400_v9 = vpop.trf.xlu1 }
 0x323   :  { %417 = vst.msk [vmem:[#allocation2 + $0x78] sm:$0xff] %vm401_vm3, %v400_v9 }
 0x324   :  { %422 = vsyncadd [#allocation3], 1920  ;;  %s530_s5 = smov [#allocation2]  }
 0x325   :  { %s423_s11 = sshll.u32 %s530_s5, 4  ;;  %s424_s11 = int_to_ptr.vmem [resolvable:$true] %s423_s11 }
 0x326   :  { %s505_s12 = scalar_lea.vmem %s424_s11, 128  ;;  %s509_s13 = scalar_lea.vmem %s424_s11, 2048 }
 0x327   :  { %p506_p0 = scmp.ne.s32.totalorder %s424_s11, %s505_s12  ;;  %p510_p1 = scmp.lt.s32.totalorder %s424_s11, %s424_s11 }
 0x328   :  { %p511_p2 = scmp.lt.s32.totalorder %s509_s13, %s505_s12 }
 0x32a   :  { %p512_p3 = por %p511_p2, %p510_p1 }
 0x32c   :  { %p513_p4 = pnand %p512_p3, %p506_p0 }
 0x32e   :  { %516 = shalt.err (!%p513_p4)
}
 0x32f   :  { %s531_s14 = smov 128   ;;  %s532_s15 = smov 8  }
 0x330   :  { %429 = dma.vmem_to_hbm [thread:$0]  %s424_s11, 128, %s668_s7, [#allocation3], %s531_s14, %s531_s14, %s532_s15  }
 0x331   :  { %525 = dma.done.wait [#allocation3], 2048  }
 0x332   :  { %526 = vsyncadd [#allocation3], 4294965248 }
 0x333   :  { %433 = vsyncpa [#allocation3], 1 }

</bundles_post_ra>
